<compile_context>
chip_gen: v7x
topology: tpu7x:2x2x1
jax: 0.10.0
libtpu: 0.0.40
codegen_flags: <defaults>
</compile_context>

<pallas_src>
import functools

import jax
import jax.numpy as jnp
from jax.experimental import pallas as pl
from jax.experimental.pallas import tpu as pltpu

LANE = 128
SUBLANE = 8


def _round_up(x, m):
    return ((x + m - 1) // m) * m


def _pick_tile(n_pad, prefs):
    for t in prefs:
        if t <= n_pad and n_pad % t == 0:
            return t
    return n_pad


# ----------------------------------------------------------------------------
# Pallas kernel: one fused GCN layer, tiled over A_hat rows (i) and cols (k).
#   acc[i]        += A_hat[i, k] @ (X[k] @ W)          (f32 accumulation)
#   at k == last:
#     H[i]         = relu(acc[i] + b)                  (bf16, next layer input)
#     pool_part[i] = P[:, tile_i] @ H[i]               (f32 partial add-pool)
# ----------------------------------------------------------------------------
def gcn_layer_kernel(a_ref, x_ref, w_ref, b_ref, p_ref,
                     h_out_ref, pool_out_ref, acc_ref):
    k = pl.program_id(1)

    @pl.when(k == 0)
    def _init():
        acc_ref[...] = jnp.zeros_like(acc_ref)

    xw = jnp.dot(x_ref[...], w_ref[...], preferred_element_type=jnp.float32)
    acc_ref[...] += jnp.dot(a_ref[...], xw.astype(jnp.bfloat16),
                            preferred_element_type=jnp.float32)

    @pl.when(k == pl.num_programs(1) - 1)
    def _finalize():
        # ReLU; dropout is identity in eval mode.
        h = jnp.maximum(acc_ref[...] + b_ref[...], 0.0)
        h_out_ref[...] = h.astype(h_out_ref.dtype)
        pool_out_ref[...] = jnp.dot(p_ref[...], h,
                                    preferred_element_type=jnp.float32)


def gcn_layer(a_hat, x, w, b2, pool_mat, *, tm, tk):
    """One GCNConv + ReLU + global_add_pool layer as a tiled pallas_call.

    a_hat:    [N_pad, N_pad]  bf16  normalized dense adjacency (zero padded)
    x:        [N_pad, C_in ]  bf16  node features (zero padded, C_in % 128 == 0)
    w:        [C_in,  C_out]  bf16  (zero padded, C_out % 128 == 0)
    b2:       [1,     C_out]  f32
    pool_mat: [B_pad, N_pad]  f32   one-hot graph membership
    returns H [N_pad, C_out] bf16, pooled [B_pad, C_out] f32
    """
    n_pad = a_hat.shape[0]
    c_in = x.shape[1]
    c_out = w.shape[1]
    b_pad = pool_mat.shape[0]
    num_i = n_pad // tm
    num_k = n_pad // tk

    flops = (2 * n_pad * n_pad * c_out             # A_hat @ XW
             + 2 * num_i * n_pad * c_in * c_out    # per-row-tile X @ W recompute
             + 2 * b_pad * n_pad * c_out)          # fused pooling
    bytes_accessed = (n_pad * n_pad * 2            # A_hat (bf16), dominant stream
                      + num_i * n_pad * c_in * 2   # X re-streamed per row tile
                      + c_in * c_out * 2
                      + b_pad * n_pad * 4
                      + n_pad * c_out * 2
                      + num_i * b_pad * c_out * 4)

    h, pool_parts = pl.pallas_call(
        gcn_layer_kernel,
        out_shape=(
            jax.ShapeDtypeStruct((n_pad, c_out), jnp.bfloat16),
            jax.ShapeDtypeStruct((num_i, b_pad, c_out), jnp.float32),
        ),
        grid_spec=pltpu.PrefetchScalarGridSpec(
            num_scalar_prefetch=0,
            grid=(num_i, num_k),
            in_specs=[
                pl.BlockSpec((tm, tk), lambda i, k: (i, k)),        # A_hat tile
                pl.BlockSpec((tk, c_in), lambda i, k: (k, 0)),      # X k-tile
                pl.BlockSpec((c_in, c_out), lambda i, k: (0, 0)),   # W (small)
                pl.BlockSpec((1, c_out), lambda i, k: (0, 0)),      # bias
                pl.BlockSpec((b_pad, tm), lambda i, k: (0, i)),     # P columns for row tile
            ],
            out_specs=(
                pl.BlockSpec((tm, c_out), lambda i, k: (i, 0)),           # H
                pl.BlockSpec((None, b_pad, c_out), lambda i, k: (i, 0, 0)),  # pool partials
            ),
            scratch_shapes=[pltpu.VMEM((tm, c_out), jnp.float32)],
        ),
        compiler_params=pltpu.CompilerParams(
            dimension_semantics=("parallel", "arbitrary"),
            vmem_limit_bytes=32 * 1024 * 1024,   # covers v5e's 16 MiB default; safe on v7x
        ),
        cost_estimate=pl.CostEstimate(
            flops=flops, transcendentals=0, bytes_accessed=bytes_accessed),
    )(a_hat, x, w, b2, pool_mat)

    pooled = jnp.sum(pool_parts, axis=0)   # tiny [num_i, B_pad, C_out] reduction
    return h, pooled


# ----------------------------------------------------------------------------
# Glue: dense normalized adjacency and pooling matrix (plain JAX, zero padded).
# ----------------------------------------------------------------------------
def build_norm_adj(edge_index, num_nodes, n_pad):
    src = edge_index[0]
    dst = edge_index[1]
    a = jnp.zeros((num_nodes, num_nodes), jnp.float32).at[dst, src].add(1.0)
    # add_self_loops in forward() + gcn_norm inside GCNConv -> diagonal weight 2
    # (assumes edge_index carries no pre-existing self loops).
    a = a + 2.0 * jnp.eye(num_nodes, dtype=jnp.float32)
    deg = a.sum(axis=1)
    dinv_sqrt = jnp.where(deg > 0.0, jax.lax.rsqrt(deg), 0.0)
    a = dinv_sqrt[:, None] * a * dinv_sqrt[None, :]
    pad = n_pad - num_nodes
    return jnp.pad(a, ((0, pad), (0, pad)))


def build_pool_matrix(batch, num_graphs, n_pad, b_pad):
    n = batch.shape[0]
    batch_pad = jnp.full((n_pad,), -1, jnp.int32).at[:n].set(batch.astype(jnp.int32))
    graph_ids = jnp.arange(b_pad, dtype=jnp.int32)
    # P[b, n] = 1 iff node n belongs to graph b (padded nodes match nothing).
    return (batch_pad[None, :] == graph_ids[:, None]).astype(jnp.float32)


# ----------------------------------------------------------------------------
# GCNNet (feature path of forward()).
# ----------------------------------------------------------------------------
def init_gcnnet_params(key, in_hid, out_hid, n_layer=3):
    """Deterministic glorot-style init for the feat_conv stack used in forward()."""
    params = []
    dims = [in_hid] + [out_hid] * n_layer
    for i in range(n_layer):
        key, kw = jax.random.split(key)
        fan_in, fan_out = dims[i], dims[i + 1]
        limit = jnp.sqrt(6.0 / (fan_in + fan_out))
        w = jax.random.uniform(kw, (fan_in, fan_out), jnp.float32, -limit, limit)
        b = jnp.zeros((fan_out,), jnp.float32)
        params.append((w, b))
    # TODO(synk): struct_conv and wlinear are initialized in __init__ but never
    # used by forward(); they are omitted here.
    return params


@functools.partial(jax.jit, static_argnums=(4,))
def gcnnet_forward(x, edge_index, batch, params, num_graphs):
    """Returns concat([global_add_pool(layer_i)], dim=1): [num_graphs, n_layer*out_hid]."""
    n, c_in = x.shape
    n_pad = _round_up(max(n, SUBLANE), LANE)
    b_pad = _round_up(max(num_graphs, 1), SUBLANE)
    tm = _pick_tile(n_pad, (256, 128))        # 256-multiple row tiles for v6e/v7x MXU
    tk = _pick_tile(n_pad, (512, 256, 128))   # reduction tile over A_hat columns

    a_hat = build_norm_adj(edge_index, n, n_pad).astype(jnp.bfloat16)
    pool_mat = build_pool_matrix(batch, num_graphs, n_pad, b_pad)

    c_in_pad = _round_up(c_in, LANE)
    h = jnp.pad(x, ((0, n_pad - n), (0, c_in_pad - c_in))).astype(jnp.bfloat16)

    outs = []
    for (w, b) in params:
        ci, co = w.shape
        ci_pad = _round_up(ci, LANE)
        co_pad = _round_up(co, LANE)
        w_p = jnp.pad(w, ((0, ci_pad - ci), (0, co_pad - co))).astype(jnp.bfloat16)
        b_p = jnp.pad(b, (0, co_pad - co)).astype(jnp.float32).reshape(1, co_pad)
        h, pooled = gcn_layer(a_hat, h, w_p, b_p, pool_mat, tm=tm, tk=tk)
        outs.append(pooled[:num_graphs, :co])
    return jnp.concatenate(outs, axis=1)


def gcnnet_reference(x, edge_index, batch, params, num_graphs):
    """Pure-JAX reference mirroring the kernel's bf16-input / f32-accumulate numerics."""
    n = x.shape[0]
    f32 = jnp.float32
    hi = jax.lax.Precision.HIGHEST
    a = build_norm_adj(edge_index, n, n).astype(jnp.bfloat16).astype(f32)
    p = (batch[None, :] == jnp.arange(num_graphs)[:, None]).astype(f32)
    h = x.astype(jnp.bfloat16).astype(f32)
    outs = []
    for (w, b) in params:
        wf = w.astype(jnp.bfloat16).astype(f32)
        xw = jnp.dot(h, wf, precision=hi).astype(jnp.bfloat16).astype(f32)
        hf = jnp.maximum(jnp.dot(a, xw, precision=hi) + b[None, :], 0.0)
        outs.append(jnp.dot(p, hf, precision=hi))
        h = hf.astype(jnp.bfloat16).astype(f32)
    return jnp.concatenate(outs, axis=1)


if __name__ == "__main__":
    key = jax.random.PRNGKey(0)

    # Small synthetic graph batch: 2 graphs of 8 nodes each (16 nodes total).
    N = 16
    IN_HID = 8
    OUT_HID = 32
    N_LAYER = 3
    NUM_GRAPHS = 2

    k_x, k_p = jax.random.split(key)
    x = jax.random.normal(k_x, (N, IN_HID), jnp.float32)

    # Ring edges inside each 8-node graph (undirected: both directions listed).
    edges = []
    for g in range(NUM_GRAPHS):
        base = g * 8
        for i in range(8):
            u = base + i
            v = base + (i + 1) % 8
            edges.append((u, v))
            edges.append((v, u))
    edge_index = jnp.array(edges, dtype=jnp.int32).T  # [2, E]

    batch = jnp.repeat(jnp.arange(NUM_GRAPHS, dtype=jnp.int32), 8)  # [N]

    params = tuple(init_gcnnet_params(k_p, IN_HID, OUT_HID, N_LAYER))

    out = gcnnet_forward(x, edge_index, batch, params, NUM_GRAPHS)
    out = jax.block_until_ready(out)

    assert out.shape == (NUM_GRAPHS, N_LAYER * OUT_HID), out.shape
    assert jnp.all(jnp.isfinite(out))

    ref = gcnnet_reference(x, edge_index, batch, params, NUM_GRAPHS)
    assert jnp.allclose(out, ref, rtol=2e-2, atol=2e-2), float(
        jnp.max(jnp.abs(out - ref)))

    print("KERNEL_OK")
</pallas_src>

<mosaic_0001>
module attributes {stable_mosaic.version = 11 : i64} {
  func.func private @main(%arg0: i32) attributes {dimension_semantics = [#tpu.dimension_semantics<core_parallel>], iteration_bounds = array<i64: 2>, tpu.core_type = #tpu.core_type<sc_scalar_subcore>, window_params = []} {
    return
  }
}

module attributes {stable_mosaic.version = 11 : i64} {
  func.func private @main(%arg0: i32) attributes {dimension_semantics = [#tpu.dimension_semantics<core_parallel>], iteration_bounds = array<i64: 2>, tpu.core_type = #tpu.core_type<sc_scalar_subcore>, window_params = []} {
    return
  }
}

module attributes {stable_mosaic.version = 11 : i64} {
  func.func @gcn_layer_kernel(%arg0: i32, %arg1: i32, %arg2: memref<128x128xbf16, #tpu.memory_space<vmem>>, %arg3: memref<128x128xbf16, #tpu.memory_space<vmem>>, %arg4: memref<128x128xbf16, #tpu.memory_space<vmem>>, %arg5: memref<1x128xf32, #tpu.memory_space<vmem>>, %arg6: memref<8x128xf32, #tpu.memory_space<vmem>>, %arg7: memref<128x128xbf16, #tpu.memory_space<vmem>>, %arg8: memref<1x8x128xf32, #tpu.memory_space<vmem>>, %arg9: memref<128x128xf32, #tpu.memory_space<vmem>>) attributes {dimension_semantics = [#tpu.dimension_semantics<parallel>, #tpu.dimension_semantics<arbitrary>], iteration_bounds = array<i64: 1, 1>, scalar_prefetch = 0 : i64, scratch_operands = 1 : i64, tpu.core_type = #tpu.core_type<tc>, window_params = [{transform_indices = @transform_0, window_bounds = array<i64: 128, 128>}, {transform_indices = @transform_1, window_bounds = array<i64: 128, 128>}, {pipeline_mode = #tpu.pipeline_mode<synchronous>, transform_indices = @transform_2, window_bounds = array<i64: 128, 128>}, {pipeline_mode = #tpu.pipeline_mode<synchronous>, transform_indices = @transform_3, window_bounds = array<i64: 1, 128>}, {transform_indices = @transform_4, window_bounds = array<i64: 8, 128>}, {transform_indices = @transform_5, window_bounds = array<i64: 128, 128>}, {transform_indices = @transform_6, window_bounds = array<i64: 1, 8, 128>}]} {
    %c0_i32 = arith.constant 0 : i32
    %0 = arith.cmpi eq, %arg1, %c0_i32 : i32
    %1 = arith.extui %0 : i1 to i32
    %c0_i32_0 = arith.constant 0 : i32
    %2 = arith.cmpi ne, %1, %c0_i32_0 : i32
    scf.if %2 {
      %cst_13 = arith.constant 0.000000e+00 : f32
      %15 = vector.broadcast %cst_13 : f32 to vector<128x128xf32>
      %c0_14 = arith.constant 0 : index
      %c0_15 = arith.constant 0 : index
      %16 = vector.load %arg9[%c0_14, %c0_15] : memref<128x128xf32, #tpu.memory_space<vmem>>, vector<128x128xf32>
      tpu.vector_store %arg9[%c0_14, %c0_15], %15 {strides = array<i32>} : memref<128x128xf32, #tpu.memory_space<vmem>>, vector<128x128xf32>,
    } else {
    }
    %c0 = arith.constant 0 : index
    %c0_1 = arith.constant 0 : index
    %3 = vector.load %arg3[%c0, %c0_1] : memref<128x128xbf16, #tpu.memory_space<vmem>>, vector<128x128xbf16>
    %c0_2 = arith.constant 0 : index
    %c0_3 = arith.constant 0 : index
    %4 = vector.load %arg4[%c0_2, %c0_3] : memref<128x128xbf16, #tpu.memory_space<vmem>>, vector<128x128xbf16>
    %cst = arith.constant dense<0.000000e+00> : vector<128x128xf32>
    %5 = tpu.matmul %3, %4, %cst {dimension_numbers = #tpu.dot_dimension_numbers<[1], [0], [0], [1], [0, 0, 1, 1], [], []>} : vector<128x128xbf16>, vector<128x128xbf16>, vector<128x128xf32> -> vector<128x128xf32>
    %c0_4 = arith.constant 0 : index
    %c0_5 = arith.constant 0 : index
    %6 = vector.load %arg9[%c0_4, %c0_5] : memref<128x128xf32, #tpu.memory_space<vmem>>, vector<128x128xf32>
    %c0_6 = arith.constant 0 : index
    %c0_7 = arith.constant 0 : index
    %7 = vector.load %arg2[%c0_6, %c0_7] : memref<128x128xbf16, #tpu.memory_space<vmem>>, vector<128x128xbf16>
    %8 = arith.truncf %5 : vector<128x128xf32> to vector<128x128xbf16>
    %cst_8 = arith.constant dense<0.000000e+00> : vector<128x128xf32>
    %9 = tpu.matmul %7, %8, %cst_8 {dimension_numbers = #tpu.dot_dimension_numbers<[1], [0], [0], [1], [0, 0, 1, 1], [], []>} : vector<128x128xbf16>, vector<128x128xbf16>, vector<128x128xf32> -> vector<128x128xf32>
    %10 = arith.addf %6, %9 : vector<128x128xf32>
    %c0_9 = arith.constant 0 : index
    %c0_10 = arith.constant 0 : index
    %11 = vector.load %arg9[%c0_9, %c0_10] : memref<128x128xf32, #tpu.memory_space<vmem>>, vector<128x128xf32>
    tpu.vector_store %arg9[%c0_9, %c0_10], %10 {strides = array<i32>} : memref<128x128xf32, #tpu.memory_space<vmem>>, vector<128x128xf32>,
    %c0_i32_11 = arith.constant 0 : i32
    %12 = arith.cmpi eq, %arg1, %c0_i32_11 : i32
    %13 = arith.extui %12 : i1 to i32
    %c0_i32_12 = arith.constant 0 : i32
    %14 = arith.cmpi ne, %13, %c0_i32_12 : i32
    scf.if %14 {
      %c0_13 = arith.constant 0 : index
      %c0_14 = arith.constant 0 : index
      %15 = vector.load %arg9[%c0_13, %c0_14] : memref<128x128xf32, #tpu.memory_space<vmem>>, vector<128x128xf32>
      %c0_15 = arith.constant 0 : index
      %c0_16 = arith.constant 0 : index
      %16 = vector.load %arg5[%c0_15, %c0_16] : memref<1x128xf32, #tpu.memory_space<vmem>>, vector<1x128xf32>
      %17 = vector.broadcast %16 : vector<1x128xf32> to vector<128x128xf32>
      %18 = arith.addf %15, %17 : vector<128x128xf32>
      %cst_17 = arith.constant 0.000000e+00 : f32
      %19 = vector.broadcast %cst_17 : f32 to vector<128x128xf32>
      %20 = arith.maximumf %18, %19 : vector<128x128xf32>
      %21 = arith.truncf %20 : vector<128x128xf32> to vector<128x128xbf16>
      %c0_18 = arith.constant 0 : index
      %c0_19 = arith.constant 0 : index
      %22 = vector.load %arg7[%c0_18, %c0_19] : memref<128x128xbf16, #tpu.memory_space<vmem>>, vector<128x128xbf16>
      tpu.vector_store %arg7[%c0_18, %c0_19], %21 {strides = array<i32>} : memref<128x128xbf16, #tpu.memory_space<vmem>>, vector<128x128xbf16>,
      %c0_20 = arith.constant 0 : index
      %c0_21 = arith.constant 0 : index
      %23 = vector.load %arg6[%c0_20, %c0_21] : memref<8x128xf32, #tpu.memory_space<vmem>>, vector<8x128xf32>
      %cst_22 = arith.constant dense<0.000000e+00> : vector<8x128xf32>
      %24 = tpu.matmul %23, %20, %cst_22 {dimension_numbers = #tpu.dot_dimension_numbers<[1], [0], [0], [1], [0, 0, 1, 1], [], []>} : vector<8x128xf32>, vector<128x128xf32>, vector<8x128xf32> -> vector<8x128xf32>
      %c0_23 = arith.constant 0 : index
      %c0_24 = arith.constant 0 : index
      %c0_25 = arith.constant 0 : index
      %25 = vector.load %arg8[%c0_23, %c0_24, %c0_25] : memref<1x8x128xf32, #tpu.memory_space<vmem>>, vector<1x8x128xf32>
      %26 = vector.shape_cast %25 : vector<1x8x128xf32> to vector<8x128xf32>
      %27 = vector.shape_cast %24 : vector<8x128xf32> to vector<1x8x128xf32>
      tpu.vector_store %arg8[%c0_23, %c0_24, %c0_25], %27 {strides = array<i32>} : memref<1x8x128xf32, #tpu.memory_space<vmem>>, vector<1x8x128xf32>,
    } else {
    }
    return
  }
  func.func @transform_0(%arg0: i32, %arg1: i32) -> (i32, i32) {
    %c0_i32 = arith.constant 0 : i32
    return %arg0, %arg1 : i32, i32
  }
  func.func @transform_1(%arg0: i32, %arg1: i32) -> (i32, i32) {
    %c0_i32 = arith.constant 0 : i32
    %c0_i32_0 = arith.constant 0 : i32
    return %arg1, %c0_i32 : i32, i32
  }
  func.func @transform_2(%arg0: i32, %arg1: i32) -> (i32, i32) {
    %c0_i32 = arith.constant 0 : i32
    %c0_i32_0 = arith.constant 0 : i32
    %c0_i32_1 = arith.constant 0 : i32
    return %c0_i32, %c0_i32_0 : i32, i32
  }
  func.func @transform_3(%arg0: i32, %arg1: i32) -> (i32, i32) {
    %c0_i32 = arith.constant 0 : i32
    %c0_i32_0 = arith.constant 0 : i32
    %c0_i32_1 = arith.constant 0 : i32
    return %c0_i32, %c0_i32_0 : i32, i32
  }
  func.func @transform_4(%arg0: i32, %arg1: i32) -> (i32, i32) {
    %c0_i32 = arith.constant 0 : i32
    %c0_i32_0 = arith.constant 0 : i32
    return %c0_i32, %arg0 : i32, i32
  }
  func.func @transform_5(%arg0: i32, %arg1: i32) -> (i32, i32) {
    %c0_i32 = arith.constant 0 : i32
    %c0_i32_0 = arith.constant 0 : i32
    return %arg0, %c0_i32 : i32, i32
  }
  func.func @transform_6(%arg0: i32, %arg1: i32) -> (i32, i32, i32) {
    %c0_i32 = arith.constant 0 : i32
    %c0_i32_0 = arith.constant 0 : i32
    %c0_i32_1 = arith.constant 0 : i32
    return %arg0, %c0_i32, %c0_i32_0 : i32, i32, i32
  }
}

module attributes {stable_mosaic.version = 11 : i64} {
  func.func @gcn_layer_kernel(%arg0: i32, %arg1: i32, %arg2: memref<128x128xbf16, #tpu.memory_space<vmem>>, %arg3: memref<128x128xbf16, #tpu.memory_space<vmem>>, %arg4: memref<128x128xbf16, #tpu.memory_space<vmem>>, %arg5: memref<1x128xf32, #tpu.memory_space<vmem>>, %arg6: memref<8x128xf32, #tpu.memory_space<vmem>>, %arg7: memref<128x128xbf16, #tpu.memory_space<vmem>>, %arg8: memref<1x8x128xf32, #tpu.memory_space<vmem>>, %arg9: memref<128x128xf32, #tpu.memory_space<vmem>>) attributes {dimension_semantics = [#tpu.dimension_semantics<parallel>, #tpu.dimension_semantics<arbitrary>], iteration_bounds = array<i64: 1, 1>, scalar_prefetch = 0 : i64, scratch_operands = 1 : i64, tpu.core_type = #tpu.core_type<tc>, window_params = [{transform_indices = @transform_0, window_bounds = array<i64: 128, 128>}, {transform_indices = @transform_1, window_bounds = array<i64: 128, 128>}, {pipeline_mode = #tpu.pipeline_mode<synchronous>, transform_indices = @transform_2, window_bounds = array<i64: 128, 128>}, {pipeline_mode = #tpu.pipeline_mode<synchronous>, transform_indices = @transform_3, window_bounds = array<i64: 1, 128>}, {transform_indices = @transform_4, window_bounds = array<i64: 8, 128>}, {transform_indices = @transform_5, window_bounds = array<i64: 128, 128>}, {transform_indices = @transform_6, window_bounds = array<i64: 1, 8, 128>}]} {
    %c0_i32 = arith.constant 0 : i32
    %0 = arith.cmpi eq, %arg1, %c0_i32 : i32
    %1 = arith.extui %0 : i1 to i32
    %c0_i32_0 = arith.constant 0 : i32
    %2 = arith.cmpi ne, %1, %c0_i32_0 : i32
    scf.if %2 {
      %cst_13 = arith.constant 0.000000e+00 : f32
      %15 = vector.broadcast %cst_13 : f32 to vector<128x128xf32>
      %c0_14 = arith.constant 0 : index
      %c0_15 = arith.constant 0 : index
      %16 = vector.load %arg9[%c0_14, %c0_15] : memref<128x128xf32, #tpu.memory_space<vmem>>, vector<128x128xf32>
      tpu.vector_store %arg9[%c0_14, %c0_15], %15 {strides = array<i32>} : memref<128x128xf32, #tpu.memory_space<vmem>>, vector<128x128xf32>,
    } else {
    }
    %c0 = arith.constant 0 : index
    %c0_1 = arith.constant 0 : index
    %3 = vector.load %arg3[%c0, %c0_1] : memref<128x128xbf16, #tpu.memory_space<vmem>>, vector<128x128xbf16>
    %c0_2 = arith.constant 0 : index
    %c0_3 = arith.constant 0 : index
    %4 = vector.load %arg4[%c0_2, %c0_3] : memref<128x128xbf16, #tpu.memory_space<vmem>>, vector<128x128xbf16>
    %cst = arith.constant dense<0.000000e+00> : vector<128x128xf32>
    %5 = tpu.matmul %3, %4, %cst {dimension_numbers = #tpu.dot_dimension_numbers<[1], [0], [0], [1], [0, 0, 1, 1], [], []>} : vector<128x128xbf16>, vector<128x128xbf16>, vector<128x128xf32> -> vector<128x128xf32>
    %c0_4 = arith.constant 0 : index
    %c0_5 = arith.constant 0 : index
    %6 = vector.load %arg9[%c0_4, %c0_5] : memref<128x128xf32, #tpu.memory_space<vmem>>, vector<128x128xf32>
    %c0_6 = arith.constant 0 : index
    %c0_7 = arith.constant 0 : index
    %7 = vector.load %arg2[%c0_6, %c0_7] : memref<128x128xbf16, #tpu.memory_space<vmem>>, vector<128x128xbf16>
    %8 = arith.truncf %5 : vector<128x128xf32> to vector<128x128xbf16>
    %cst_8 = arith.constant dense<0.000000e+00> : vector<128x128xf32>
    %9 = tpu.matmul %7, %8, %cst_8 {dimension_numbers = #tpu.dot_dimension_numbers<[1], [0], [0], [1], [0, 0, 1, 1], [], []>} : vector<128x128xbf16>, vector<128x128xbf16>, vector<128x128xf32> -> vector<128x128xf32>
    %10 = arith.addf %6, %9 : vector<128x128xf32>
    %c0_9 = arith.constant 0 : index
    %c0_10 = arith.constant 0 : index
    %11 = vector.load %arg9[%c0_9, %c0_10] : memref<128x128xf32, #tpu.memory_space<vmem>>, vector<128x128xf32>
    tpu.vector_store %arg9[%c0_9, %c0_10], %10 {strides = array<i32>} : memref<128x128xf32, #tpu.memory_space<vmem>>, vector<128x128xf32>,
    %c0_i32_11 = arith.constant 0 : i32
    %12 = arith.cmpi eq, %arg1, %c0_i32_11 : i32
    %13 = arith.extui %12 : i1 to i32
    %c0_i32_12 = arith.constant 0 : i32
    %14 = arith.cmpi ne, %13, %c0_i32_12 : i32
    scf.if %14 {
      %c0_13 = arith.constant 0 : index
      %c0_14 = arith.constant 0 : index
      %15 = vector.load %arg9[%c0_13, %c0_14] : memref<128x128xf32, #tpu.memory_space<vmem>>, vector<128x128xf32>
      %c0_15 = arith.constant 0 : index
      %c0_16 = arith.constant 0 : index
      %16 = vector.load %arg5[%c0_15, %c0_16] : memref<1x128xf32, #tpu.memory_space<vmem>>, vector<1x128xf32>
      %17 = vector.broadcast %16 : vector<1x128xf32> to vector<128x128xf32>
      %18 = arith.addf %15, %17 : vector<128x128xf32>
      %cst_17 = arith.constant 0.000000e+00 : f32
      %19 = vector.broadcast %cst_17 : f32 to vector<128x128xf32>
      %20 = arith.maximumf %18, %19 : vector<128x128xf32>
      %21 = arith.truncf %20 : vector<128x128xf32> to vector<128x128xbf16>
      %c0_18 = arith.constant 0 : index
      %c0_19 = arith.constant 0 : index
      %22 = vector.load %arg7[%c0_18, %c0_19] : memref<128x128xbf16, #tpu.memory_space<vmem>>, vector<128x128xbf16>
      tpu.vector_store %arg7[%c0_18, %c0_19], %21 {strides = array<i32>} : memref<128x128xbf16, #tpu.memory_space<vmem>>, vector<128x128xbf16>,
      %c0_20 = arith.constant 0 : index
      %c0_21 = arith.constant 0 : index
      %23 = vector.load %arg6[%c0_20, %c0_21] : memref<8x128xf32, #tpu.memory_space<vmem>>, vector<8x128xf32>
      %cst_22 = arith.constant dense<0.000000e+00> : vector<8x128xf32>
      %24 = tpu.matmul %23, %20, %cst_22 {dimension_numbers = #tpu.dot_dimension_numbers<[1], [0], [0], [1], [0, 0, 1, 1], [], []>} : vector<8x128xf32>, vector<128x128xf32>, vector<8x128xf32> -> vector<8x128xf32>
      %c0_23 = arith.constant 0 : index
      %c0_24 = arith.constant 0 : index
      %c0_25 = arith.constant 0 : index
      %25 = vector.load %arg8[%c0_23, %c0_24, %c0_25] : memref<1x8x128xf32, #tpu.memory_space<vmem>>, vector<1x8x128xf32>
      %26 = vector.shape_cast %25 : vector<1x8x128xf32> to vector<8x128xf32>
      %27 = vector.shape_cast %24 : vector<8x128xf32> to vector<1x8x128xf32>
      tpu.vector_store %arg8[%c0_23, %c0_24, %c0_25], %27 {strides = array<i32>} : memref<1x8x128xf32, #tpu.memory_space<vmem>>, vector<1x8x128xf32>,
    } else {
    }
    return
  }
  func.func @transform_0(%arg0: i32, %arg1: i32) -> (i32, i32) {
    %c0_i32 = arith.constant 0 : i32
    return %arg0, %arg1 : i32, i32
  }
  func.func @transform_1(%arg0: i32, %arg1: i32) -> (i32, i32) {
    %c0_i32 = arith.constant 0 : i32
    %c0_i32_0 = arith.constant 0 : i32
    return %arg1, %c0_i32 : i32, i32
  }
  func.func @transform_2(%arg0: i32, %arg1: i32) -> (i32, i32) {
    %c0_i32 = arith.constant 0 : i32
    %c0_i32_0 = arith.constant 0 : i32
    %c0_i32_1 = arith.constant 0 : i32
    return %c0_i32, %c0_i32_0 : i32, i32
  }
  func.func @transform_3(%arg0: i32, %arg1: i32) -> (i32, i32) {
    %c0_i32 = arith.constant 0 : i32
    %c0_i32_0 = arith.constant 0 : i32
    %c0_i32_1 = arith.constant 0 : i32
    return %c0_i32, %c0_i32_0 : i32, i32
  }
  func.func @transform_4(%arg0: i32, %arg1: i32) -> (i32, i32) {
    %c0_i32 = arith.constant 0 : i32
    %c0_i32_0 = arith.constant 0 : i32
    return %c0_i32, %arg0 : i32, i32
  }
  func.func @transform_5(%arg0: i32, %arg1: i32) -> (i32, i32) {
    %c0_i32 = arith.constant 0 : i32
    %c0_i32_0 = arith.constant 0 : i32
    return %arg0, %c0_i32 : i32, i32
  }
  func.func @transform_6(%arg0: i32, %arg1: i32) -> (i32, i32, i32) {
    %c0_i32 = arith.constant 0 : i32
    %c0_i32_0 = arith.constant 0 : i32
    %c0_i32_1 = arith.constant 0 : i32
    return %arg0, %c0_i32, %c0_i32_0 : i32, i32, i32
  }
}

</mosaic_0001>

<bundles_post_ra>
// kernel: gcnnet_forward.3
= control target key start
LH: loop header
LB: loop body
LE: loop exit
PB: predicated region body
PF: predicated region fallthrough
CT: control target
= control target key end

     0   :  { %v1006_v48 = vmov 0.0|0.0   ;;  %vm1007_vm0 = vmmov 0   ;;  %v1008_v49 = vmov 0.0   ;;  %s1175_s2 = inlined_call_operand.vmem [shape: bf16[128,128], index: 2, kind: input, shape index: {}]   ;;  %s1176_s1 = inlined_call_operand.vmem [shape: bf16[128,128], index: 1, kind: input, shape index: {}]   ;;  %s1177_s0 = inlined_call_operand.vmem [shape: bf16[128,128], index: 0, kind: input, shape index: {}]   ;;  %s1178_s3 = inlined_call_operand.vmem [shape: f32[1,128], index: 3, kind: input, shape index: {}]   ;;  %s1179_s5 = inlined_call_operand.vmem [shape: bf16[128,128], index: 5, kind: output, shape index: {0}]   ;;  %s1180_s4 = inlined_call_operand.vmem [shape: f32[8,128], index: 4, kind: input, shape index: {}]   ;;  %s1181_s6 = inlined_call_operand.vmem [shape: f32[1,8,128], index: 6, kind: output, shape index: {1}]  }
   0x1   :  { %v982_v0 = vld [vmem:[%s1175_s2] sm:$0xff]   ;;  %v983_v1 = vld [vmem:[%s1175_s2 + $0x8] sm:$0xff]   ;;  %v984_v2 = vld [vmem:[%s1175_s2 + $0x10] sm:$0xff]  }
   0x2   :  { %856 = vmatprep.subr.bf16.mxu0 %v982_v0  ;;  %v985_v3 = vld [vmem:[%s1175_s2 + $0x18] sm:$0xff]   ;;  %v990_v4 = vld [vmem:[%s1176_s1] sm:$0xff]   ;;  %v987_v6 = vld [vmem:[%s1175_s2 + $0x28] sm:$0xff]  }
   0x3   :  { %857 = vmatpush3.bf16.msra.mxu0 %v982_v0  ;;  %872 = vmatprep.mubr.bf16.mxu0 %v990_v4  ;;  %v986_v5 = vld [vmem:[%s1175_s2 + $0x20] sm:$0xff]   ;;  %v988_v7 = vld [vmem:[%s1175_s2 + $0x30] sm:$0xff]   ;;  %v989_v8 = vld [vmem:[%s1175_s2 + $0x38] sm:$0xff]  }
   0x4   :  { %858 = vmatprep.subr.bf16.mxu0 %v983_v1  ;;  %v991_v9 = vld [vmem:[%s1176_s1 + $0x8] sm:$0xff]   ;;  %v992_v10 = vld [vmem:[%s1176_s1 + $0x10] sm:$0xff]   ;;  %v993_v11 = vld [vmem:[%s1176_s1 + $0x18] sm:$0xff]  }
   0x5   :  { %v994_v12 = vld [vmem:[%s1176_s1 + $0x20] sm:$0xff]   ;;  %v995_v13 = vld [vmem:[%s1176_s1 + $0x28] sm:$0xff]   ;;  %v996_v14 = vld [vmem:[%s1176_s1 + $0x30] sm:$0xff]  }
   0x6   :  { %v997_v15 = vld [vmem:[%s1176_s1 + $0x38] sm:$0xff]   ;;  %v998_v16 = vld [vmem:[%s1177_s0] sm:$0xff]   ;;  %v999_v41 = vld [vmem:[%s1177_s0 + $0x8] sm:$0xff]  }
   0x7   :  { %859 = vmatpush3.bf16.msra.mxu0 %v983_v1  ;;  %904 = vmatprep.mubr.bf16.mxu1 %v998_v16  ;;  %v1000_v42 = vld [vmem:[%s1177_s0 + $0x10] sm:$0xff]   ;;  %v1001_v43 = vld [vmem:[%s1177_s0 + $0x18] sm:$0xff]   ;;  %v1002_v44 = vld [vmem:[%s1177_s0 + $0x20] sm:$0xff]  }
   0x8   :  { %860 = vmatprep.subr.bf16.mxu0 %v984_v2  ;;  %v1003_v45 = vld [vmem:[%s1177_s0 + $0x28] sm:$0xff]   ;;  %v1004_v46 = vld [vmem:[%s1177_s0 + $0x30] sm:$0xff]   ;;  %v1005_v47 = vld [vmem:[%s1177_s0 + $0x38] sm:$0xff]  }
   0x9   :  { %v1120_v50 = vld [vmem:[%s1178_s3] ss:$0 sm:$0xff] }
   0xb   :  { %861 = vmatpush3.bf16.msra.mxu0 %v984_v2 }
   0xc   :  { %862 = vmatprep.subr.bf16.mxu0 %v985_v3 }
   0xf   :  { %863 = vmatpush3.bf16.msra.mxu0 %v985_v3 }
  0x10   :  { %864 = vmatprep.subr.bf16.mxu0 %v986_v5 }
  0x13   :  { %865 = vmatpush3.bf16.msra.mxu0 %v986_v5 }
  0x14   :  { %866 = vmatprep.subr.bf16.mxu0 %v987_v6 }
  0x17   :  { %867 = vmatpush3.bf16.msra.mxu0 %v987_v6 }
  0x18   :  { %868 = vmatprep.subr.bf16.mxu0 %v988_v7 }
  0x1b   :  { %869 = vmatpush3.bf16.msra.mxu0 %v988_v7 }
  0x1c   :  { %870 = vmatprep.subr.bf16.mxu0 %v989_v8 }
  0x1f   :  { %871 = vmatpush3.bf16.msra.mxu0 %v989_v8 }
  0x20   :  { %955 = vmatprep.subr.bf16.mxu0 %v1006_v48 }
  0x22   :  { %873 = vmatmul.mubr.bf16.vlgmr.msra.gmra.mrb[0].mxu0 %v991_v9 }
  0x23   :  { %876 = vmatprep.mubr.bf16.mxu0 %v992_v10 }
  0x2a   :  { %877 = vmatmul.mubr.bf16.gmra.mrb[4].mxu0 %v993_v11 }
  0x2b   :  { %880 = vmatprep.mubr.bf16.mxu0 %v994_v12 }
  0x32   :  { %881 = vmatmul.mubr.bf16.gmra.mrb[8].mxu0 %v995_v13 }
  0x33   :  { %884 = vmatprep.mubr.bf16.mxu0 %v996_v14 }
  0x3a   :  { %885 = vmatmul.mubr.bf16.gmra.mrb[12].mxu0 %v997_v15 }
  0x3b   :  { %952 = vmatprep.mubr.msk.f32.mxu0 %vm1007_vm0, %v1008_v49 }
  0xf5   :  { %v874_v17 = vpop.f32.mrb[0].mxu0 }
  0xf6   :  { %v205_v18 = vpop.f32.mrb[1].mxu0 }
  0xf7   :  { %v875_v19 = vpop.f32.mrb[2].mxu0 }
  0xf8   :  { %v301_v20 = vpack.c.bf16 %v875_v19, %v874_v17  ;;  %v208_v21 = vpop.f32.mrb[3].mxu0 }
  0xf9   :  { %v300_v22 = vpack.c.bf16 %v208_v21, %v205_v18 }
  0xfb   :  { %888 = vmatprep.subr.bf16.mxu1 %v300_v22 }
  0xfc   :  { %889 = vmatpush3.bf16.msra.mxu1 %v300_v22 }
  0xfd   :  { %v878_v23 = vpop.f32.mrb[4].mxu0  ;;  %890 = vmatprep.subr.bf16.mxu1 %v301_v20 }
  0xfe   :  { %v221_v24 = vpop.f32.mrb[5].mxu0 }
  0xff   :  { %v879_v25 = vpop.f32.mrb[6].mxu0 }
 0x100   :  { %v303_v26 = vpack.c.bf16 %v879_v25, %v878_v23  ;;  %v224_v27 = vpop.f32.mrb[7].mxu0  ;;  %891 = vmatpush3.bf16.msra.mxu1 %v301_v20 }
 0x101   :  { %v302_v28 = vpack.c.bf16 %v224_v27, %v221_v24 }
 0x103   :  { %892 = vmatprep.subr.bf16.mxu1 %v302_v28 }
 0x104   :  { %893 = vmatpush3.bf16.msra.mxu1 %v302_v28 }
 0x105   :  { %v882_v29 = vpop.f32.mrb[8].mxu0  ;;  %894 = vmatprep.subr.bf16.mxu1 %v303_v26 }
 0x106   :  { %v237_v30 = vpop.f32.mrb[9].mxu0 }
 0x107   :  { %v883_v31 = vpop.f32.mrb[10].mxu0 }
 0x108   :  { %v305_v32 = vpack.c.bf16 %v883_v31, %v882_v29  ;;  %v240_v33 = vpop.f32.mrb[11].mxu0  ;;  %895 = vmatpush3.bf16.msra.mxu1 %v303_v26 }
 0x109   :  { %v304_v34 = vpack.c.bf16 %v240_v33, %v237_v30 }
 0x10b   :  { %896 = vmatprep.subr.bf16.mxu1 %v304_v34 }
 0x10c   :  { %897 = vmatpush3.bf16.msra.mxu1 %v304_v34 }
 0x10d   :  { %v886_v35 = vpop.f32.mrb[12].mxu0  ;;  %898 = vmatprep.subr.bf16.mxu1 %v305_v32 }
 0x10e   :  { %v253_v36 = vpop.f32.mrb[13].mxu0 }
 0x10f   :  { %v887_v37 = vpop.f32.mrb[14].mxu0 }
 0x110   :  { %v307_v38 = vpack.c.bf16 %v887_v37, %v886_v35  ;;  %v256_v39 = vpop.f32.mrb[15].mxu0  ;;  %899 = vmatpush3.bf16.msra.mxu1 %v305_v32 }
 0x111   :  { %v306_v40 = vpack.c.bf16 %v256_v39, %v253_v36 }
 0x113   :  { %900 = vmatprep.subr.bf16.mxu1 %v306_v40 }
 0x114   :  { %901 = vmatpush3.bf16.msra.mxu1 %v306_v40 }
 0x115   :  { %902 = vmatprep.subr.bf16.mxu1 %v307_v38 }
 0x118   :  { %903 = vmatpush3.bf16.msra.mxu1 %v307_v38 }
 0x11b   :  { %905 = vmatmul.mubr.bf16.vlgmr.msra.gmra.mrb[0].mxu1 %v999_v41 }
 0x11c   :  { %908 = vmatprep.mubr.bf16.mxu1 %v1000_v42 }
 0x123   :  { %909 = vmatmul.mubr.bf16.gmra.mrb[4].mxu1 %v1001_v43  ;;  %v623_v43 = vld [vmem:[%s1180_s4] sm:$0xff] }
 0x124   :  { %912 = vmatprep.mubr.bf16.mxu1 %v1002_v44 }
 0x12b   :  { %913 = vmatmul.mubr.bf16.gmra.mrb[8].mxu1 %v1003_v45 }
 0x12c   :  { %916 = vmatprep.mubr.bf16.mxu1 %v1004_v46 }
 0x133   :  { %917 = vmatmul.mubr.bf16.gmra.mrb[12].mxu1 %v1005_v47 }
 0x1ee   :  { %v906_v51 = vpop.f32.mrb[0].mxu1 }
 0x1ef   :  { %v513_v52 = vadd.f32 %v906_v51, %v1120_v50  ;;  %v390_v53 = vpop.f32.mrb[1].mxu1 }
 0x1f0   :  { %v511_v54 = vadd.f32 %v1120_v50, %v390_v53  ;;  %v907_v55 = vpop.f32.mrb[2].mxu1 }
 0x1f1   :  { %v514_v56 = vadd.f32 %v907_v55, %v1120_v50  ;;  %v393_v57 = vpop.f32.mrb[3].mxu1  ;;  %v529_v59 = vmax.f32 %v513_v52, 0.0 }
 0x1f2   :  { %v512_v58 = vadd.f32 %v1120_v50, %v393_v57  ;;  %v527_v61 = vmax.f32 %v511_v54, 0.0 }
 0x1f3   :  { %v530_v60 = vmax.f32 %v514_v56, 0.0 }
 0x1f4   :  { %v528_v62 = vmax.f32 %v512_v58, 0.0 }
 0x1f5   :  { %v768_v63 = vpack.c.bf16 %v530_v60, %v529_v59 }
 0x1f6   :  { %v763_v0 = vpack.c.bf16 %v528_v62, %v527_v61  ;;  %v910_v1 = vpop.f32.mrb[4].mxu1 }
 0x1f7   :  { %800 = vst [vmem:[%s1179_s5 + $0x8] sm:$0xff] %v768_v63   ;;  %v517_v2 = vadd.f32 %v910_v1, %v1120_v50  ;;  %v406_v3 = vpop.f32.mrb[5].mxu1 }
 0x1f8   :  { %764 = vst [vmem:[%s1179_s5] sm:$0xff] %v763_v0   ;;  %v515_v4 = vadd.f32 %v1120_v50, %v406_v3  ;;  %v911_v5 = vpop.f32.mrb[6].mxu1  ;;  %957 = vmatpush3.bf16.msra.mxu0 %v763_v0 }
 0x1f9   :  { %v518_v6 = vadd.f32 %v911_v5, %v1120_v50  ;;  %v409_v7 = vpop.f32.mrb[7].mxu1  ;;  %958 = vmatprep.subr.bf16.mxu0 %v1006_v48  ;;  %v533_v9 = vmax.f32 %v517_v2, 0.0 }
 0x1fa   :  { %v516_v8 = vadd.f32 %v1120_v50, %v409_v7  ;;  %v531_v11 = vmax.f32 %v515_v4, 0.0 }
 0x1fb   :  { %v534_v10 = vmax.f32 %v518_v6, 0.0 }
 0x1fc   :  { %v532_v12 = vmax.f32 %v516_v8, 0.0  ;;  %960 = vmatpush3.bf16.msra.mxu0 %v768_v63 }
 0x1fd   :  { %v778_v13 = vpack.c.bf16 %v534_v10, %v533_v9  ;;  %961 = vmatprep.subr.bf16.mxu0 %v1006_v48 }
 0x1fe   :  { %v773_v14 = vpack.c.bf16 %v532_v12, %v531_v11  ;;  %v914_v15 = vpop.f32.mrb[8].mxu1 }
 0x1ff   :  { %802 = vst [vmem:[%s1179_s5 + $0x18] sm:$0xff] %v778_v13   ;;  %v521_v16 = vadd.f32 %v914_v15, %v1120_v50  ;;  %v422_v17 = vpop.f32.mrb[9].mxu1 }
 0x200   :  { %801 = vst [vmem:[%s1179_s5 + $0x10] sm:$0xff] %v773_v14   ;;  %v519_v18 = vadd.f32 %v1120_v50, %v422_v17  ;;  %v915_v19 = vpop.f32.mrb[10].mxu1  ;;  %963 = vmatpush3.bf16.msra.mxu0 %v773_v14 }
 0x201   :  { %v522_v20 = vadd.f32 %v915_v19, %v1120_v50  ;;  %v425_v21 = vpop.f32.mrb[11].mxu1  ;;  %964 = vmatprep.subr.bf16.mxu0 %v1006_v48  ;;  %v537_v23 = vmax.f32 %v521_v16, 0.0 }
 0x202   :  { %v520_v22 = vadd.f32 %v1120_v50, %v425_v21  ;;  %v535_v25 = vmax.f32 %v519_v18, 0.0 }
 0x203   :  { %v538_v24 = vmax.f32 %v522_v20, 0.0 }
 0x204   :  { %v536_v26 = vmax.f32 %v520_v22, 0.0  ;;  %966 = vmatpush3.bf16.msra.mxu0 %v778_v13 }
 0x205   :  { %v788_v27 = vpack.c.bf16 %v538_v24, %v537_v23  ;;  %967 = vmatprep.subr.bf16.mxu0 %v1006_v48 }
 0x206   :  { %v783_v28 = vpack.c.bf16 %v536_v26, %v535_v25  ;;  %v918_v29 = vpop.f32.mrb[12].mxu1 }
 0x207   :  { %804 = vst [vmem:[%s1179_s5 + $0x28] sm:$0xff] %v788_v27   ;;  %v525_v30 = vadd.f32 %v918_v29, %v1120_v50  ;;  %v438_v31 = vpop.f32.mrb[13].mxu1 }
 0x208   :  { %803 = vst [vmem:[%s1179_s5 + $0x20] sm:$0xff] %v783_v28   ;;  %v523_v32 = vadd.f32 %v1120_v50, %v438_v31  ;;  %v919_v33 = vpop.f32.mrb[14].mxu1  ;;  %969 = vmatpush3.bf16.msra.mxu0 %v783_v28 }
 0x209   :  { %v526_v34 = vadd.f32 %v919_v33, %v1120_v50  ;;  %v441_v35 = vpop.f32.mrb[15].mxu1  ;;  %970 = vmatprep.subr.bf16.mxu0 %v1006_v48  ;;  %v541_v37 = vmax.f32 %v525_v30, 0.0 }
 0x20a   :  { %v524_v36 = vadd.f32 %v1120_v50, %v441_v35  ;;  %v539_v39 = vmax.f32 %v523_v32, 0.0 }
 0x20b   :  { %v542_v38 = vmax.f32 %v526_v34, 0.0 }
 0x20c   :  { %v540_v40 = vmax.f32 %v524_v36, 0.0  ;;  %972 = vmatpush3.bf16.msra.mxu0 %v788_v27 }
 0x20d   :  { %v798_v41 = vpack.c.bf16 %v542_v38, %v541_v37  ;;  %973 = vmatprep.subr.bf16.mxu0 %v1006_v48 }
 0x20e   :  { %v793_v42 = vpack.c.bf16 %v540_v40, %v539_v39 }
 0x20f   :  { %806 = vst [vmem:[%s1179_s5 + $0x38] sm:$0xff] %v798_v41  }
 0x210   :  { %805 = vst [vmem:[%s1179_s5 + $0x30] sm:$0xff] %v793_v42   ;;  %975 = vmatpush3.bf16.msra.mxu0 %v793_v42 }
 0x211   :  { %976 = vmatprep.subr.bf16.mxu0 %v1006_v48 }
 0x214   :  { %978 = vmatpush3.bf16.msra.mxu0 %v798_v41 }
 0x217   :  { %953 = vmatmul.mubr.f32.vlgmr.msra.gmra.mrb[16].mxu0 %v623_v43 }
 0x2ea   :  { %v690_v44 = vpop.f32.mrb[16].mxu0 }
 0x2eb   :  { %694 = vst [vmem:[%s1181_s6] sm:$0xff] %v690_v44  ;;  %v954_v45 = vpop.f32.mrb[17].mxu0 }

// kernel: gcnnet_forward.5
= control target key start
LH: loop header
LB: loop body
LE: loop exit
PB: predicated region body
PF: predicated region fallthrough
CT: control target
= control target key end

     0   :  { %s1206_s0 = inlined_call_operand.vmem [shape: bf16[128,128], index: 0, kind: input, shape index: {}]   ;;  %s1207_s1 = inlined_call_operand.vmem [shape: bf16[128,128], index: 1, kind: input, shape index: {}]   ;;  %s1208_s2 = inlined_call_operand.vmem [shape: bf16[128,128], index: 2, kind: input, shape index: {}]   ;;  %s1209_s3 = inlined_call_operand.vmem [shape: f32[1,128], index: 3, kind: input, shape index: {}]   ;;  %s1210_s4 = inlined_call_operand.vmem [shape: f32[8,128], index: 4, kind: input, shape index: {}]   ;;  %s1211_s5 = inlined_call_operand.hbm [shape: bf16[128,128], index: 5, kind: output, shape index: {0}]   ;;  %s1212_s6 = inlined_call_operand.vmem [shape: f32[1,8,128], index: 6, kind: output, shape index: {1}]  }
   0x1   :  { %v998_v0 = vld [vmem:[%s1208_s2] sm:$0xff]   ;;  %v999_v1 = vld [vmem:[%s1208_s2 + $0x8] sm:$0xff]   ;;  %v1000_v2 = vld [vmem:[%s1208_s2 + $0x10] sm:$0xff]  }
   0x2   :  { %869 = vmatprep.subr.bf16.mxu0 %v998_v0  ;;  %v1001_v3 = vld [vmem:[%s1208_s2 + $0x18] sm:$0xff]   ;;  %v1006_v4 = vld [vmem:[%s1207_s1] sm:$0xff]   ;;  %v1003_v6 = vld [vmem:[%s1208_s2 + $0x28] sm:$0xff]  }
   0x3   :  { %870 = vmatpush3.bf16.msra.mxu0 %v998_v0  ;;  %885 = vmatprep.mubr.bf16.mxu0 %v1006_v4  ;;  %v1002_v5 = vld [vmem:[%s1208_s2 + $0x20] sm:$0xff]   ;;  %v1004_v7 = vld [vmem:[%s1208_s2 + $0x30] sm:$0xff]  }
   0x4   :  { %871 = vmatprep.subr.bf16.mxu0 %v999_v1 }
   0x7   :  { %872 = vmatpush3.bf16.msra.mxu0 %v999_v1 }
   0x8   :  { %873 = vmatprep.subr.bf16.mxu0 %v1000_v2 }
   0xb   :  { %874 = vmatpush3.bf16.msra.mxu0 %v1000_v2 }
   0xc   :  { %875 = vmatprep.subr.bf16.mxu0 %v1001_v3 }
   0xf   :  { %876 = vmatpush3.bf16.msra.mxu0 %v1001_v3 }
  0x10   :  { %877 = vmatprep.subr.bf16.mxu0 %v1002_v5 }
  0x13   :  { %878 = vmatpush3.bf16.msra.mxu0 %v1002_v5 }
  0x14   :  { %879 = vmatprep.subr.bf16.mxu0 %v1003_v6 }
  0x15   :  { %12 = vsyncpa [#allocation4], 0  ;;  %v1005_v8 = vld [vmem:[%s1208_s2 + $0x38] sm:$0xff]   ;;  %v1007_v9 = vld [vmem:[%s1207_s1 + $0x8] sm:$0xff]   ;;  %v1046_v48 = vmov 0.0|0.0   ;;  %vm1047_vm0 = vmmov 0  }
  0x16   :  { %v1008_v10 = vld [vmem:[%s1207_s1 + $0x10] sm:$0xff]   ;;  %v1009_v11 = vld [vmem:[%s1207_s1 + $0x18] sm:$0xff]   ;;  %v1010_v12 = vld [vmem:[%s1207_s1 + $0x20] sm:$0xff]   ;;  %v1048_v49 = vmov 0.0   ;;  %s1049_s21 = smov [#allocation3]  }
  0x17   :  { %880 = vmatpush3.bf16.msra.mxu0 %v1003_v6  ;;  %v1011_v13 = vld [vmem:[%s1207_s1 + $0x28] sm:$0xff]   ;;  %v1012_v14 = vld [vmem:[%s1207_s1 + $0x30] sm:$0xff]   ;;  %v1013_v15 = vld [vmem:[%s1207_s1 + $0x38] sm:$0xff]   ;;  %s701_s22 = sshll.u32 %s1049_s21, 4  ;;  %s702_s22 = int_to_ptr.vmem [resolvable:$true] %s701_s22 }
  0x18   :  { %881 = vmatprep.subr.bf16.mxu0 %v1004_v7  ;;  %v1014_v16 = vld [vmem:[%s1206_s0] sm:$0xff]   ;;  %v1015_v41 = vld [vmem:[%s1206_s0 + $0x8] sm:$0xff]   ;;  %v1016_v42 = vld [vmem:[%s1206_s0 + $0x10] sm:$0xff]   ;;  %s1022_s2 = scalar_lea.vmem %s702_s22, 1024  ;;  %p1027_p1 = scmp.lt.s32.totalorder %s702_s22, %s702_s22 }
  0x19   :  { %917 = vmatprep.mubr.bf16.mxu1 %v1014_v16  ;;  %v1017_v43 = vld [vmem:[%s1206_s0 + $0x18] sm:$0xff]   ;;  %v1018_v44 = vld [vmem:[%s1206_s0 + $0x20] sm:$0xff]   ;;  %v1019_v45 = vld [vmem:[%s1206_s0 + $0x28] sm:$0xff]   ;;  %p1023_p0 = scmp.ne.s32.totalorder %s702_s22, %s1022_s2  ;;  %p1028_p2 = scmp.lt.s32.totalorder %s1022_s2, %s1022_s2 }
  0x1a   :  { %v1020_v46 = vld [vmem:[%s1206_s0 + $0x30] sm:$0xff]   ;;  %v1021_v47 = vld [vmem:[%s1206_s0 + $0x38] sm:$0xff]   ;;  %v1163_v50 = vld [vmem:[%s1209_s3] ss:$0 sm:$0xff] }
  0x1b   :  { %882 = vmatpush3.bf16.msra.mxu0 %v1004_v7  ;;  %p1029_p3 = por %p1028_p2, %p1027_p1 }
  0x1c   :  { %883 = vmatprep.subr.bf16.mxu0 %v1005_v8 }
  0x1d   :  { %p1030_p4 = pnand %p1029_p3, %p1023_p0 }
  0x1f   :  { %884 = vmatpush3.bf16.msra.mxu0 %v1005_v8 }
  0x20   :  { %968 = vmatprep.subr.bf16.mxu0 %v1046_v48 }
  0x22   :  { %886 = vmatmul.mubr.bf16.vlgmr.msra.gmra.mrb[0].mxu0 %v1007_v9 }
  0x23   :  { %889 = vmatprep.mubr.bf16.mxu0 %v1008_v10 }
  0x2a   :  { %890 = vmatmul.mubr.bf16.gmra.mrb[4].mxu0 %v1009_v11 }
  0x2b   :  { %893 = vmatprep.mubr.bf16.mxu0 %v1010_v12 }
  0x32   :  { %894 = vmatmul.mubr.bf16.gmra.mrb[8].mxu0 %v1011_v13 }
  0x33   :  { %897 = vmatprep.mubr.bf16.mxu0 %v1012_v14 }
  0x3a   :  { %898 = vmatmul.mubr.bf16.gmra.mrb[12].mxu0 %v1013_v15 }
  0x3b   :  { %965 = vmatprep.mubr.msk.f32.mxu0 %vm1047_vm0, %v1048_v49 }
  0xf5   :  { %v887_v17 = vpop.f32.mrb[0].mxu0 }
  0xf6   :  { %v206_v18 = vpop.f32.mrb[1].mxu0 }
  0xf7   :  { %v888_v19 = vpop.f32.mrb[2].mxu0 }
  0xf8   :  { %v302_v20 = vpack.c.bf16 %v888_v19, %v887_v17  ;;  %v209_v21 = vpop.f32.mrb[3].mxu0 }
  0xf9   :  { %v301_v22 = vpack.c.bf16 %v209_v21, %v206_v18 }
  0xfb   :  { %901 = vmatprep.subr.bf16.mxu1 %v301_v22 }
  0xfc   :  { %902 = vmatpush3.bf16.msra.mxu1 %v301_v22 }
  0xfd   :  { %v891_v23 = vpop.f32.mrb[4].mxu0  ;;  %903 = vmatprep.subr.bf16.mxu1 %v302_v20 }
  0xfe   :  { %v222_v24 = vpop.f32.mrb[5].mxu0 }
  0xff   :  { %v892_v25 = vpop.f32.mrb[6].mxu0 }
 0x100   :  { %v304_v26 = vpack.c.bf16 %v892_v25, %v891_v23  ;;  %v225_v27 = vpop.f32.mrb[7].mxu0  ;;  %904 = vmatpush3.bf16.msra.mxu1 %v302_v20 }
 0x101   :  { %v303_v28 = vpack.c.bf16 %v225_v27, %v222_v24 }
 0x103   :  { %905 = vmatprep.subr.bf16.mxu1 %v303_v28 }
 0x104   :  { %906 = vmatpush3.bf16.msra.mxu1 %v303_v28 }
 0x105   :  { %v895_v29 = vpop.f32.mrb[8].mxu0  ;;  %907 = vmatprep.subr.bf16.mxu1 %v304_v26 }
 0x106   :  { %v238_v30 = vpop.f32.mrb[9].mxu0 }
 0x107   :  { %v896_v31 = vpop.f32.mrb[10].mxu0 }
 0x108   :  { %v306_v32 = vpack.c.bf16 %v896_v31, %v895_v29  ;;  %v241_v33 = vpop.f32.mrb[11].mxu0  ;;  %908 = vmatpush3.bf16.msra.mxu1 %v304_v26 }
 0x109   :  { %v305_v34 = vpack.c.bf16 %v241_v33, %v238_v30 }
 0x10b   :  { %909 = vmatprep.subr.bf16.mxu1 %v305_v34 }
 0x10c   :  { %910 = vmatpush3.bf16.msra.mxu1 %v305_v34 }
 0x10d   :  { %v899_v35 = vpop.f32.mrb[12].mxu0  ;;  %911 = vmatprep.subr.bf16.mxu1 %v306_v32 }
 0x10e   :  { %v254_v36 = vpop.f32.mrb[13].mxu0 }
 0x10f   :  { %v900_v37 = vpop.f32.mrb[14].mxu0 }
 0x110   :  { %v308_v38 = vpack.c.bf16 %v900_v37, %v899_v35  ;;  %v257_v39 = vpop.f32.mrb[15].mxu0  ;;  %912 = vmatpush3.bf16.msra.mxu1 %v306_v32 }
 0x111   :  { %v307_v40 = vpack.c.bf16 %v257_v39, %v254_v36 }
 0x113   :  { %913 = vmatprep.subr.bf16.mxu1 %v307_v40 }
 0x114   :  { %914 = vmatpush3.bf16.msra.mxu1 %v307_v40 }
 0x115   :  { %915 = vmatprep.subr.bf16.mxu1 %v308_v38 }
 0x118   :  { %916 = vmatpush3.bf16.msra.mxu1 %v308_v38 }
 0x11b   :  { %918 = vmatmul.mubr.bf16.vlgmr.msra.gmra.mrb[0].mxu1 %v1015_v41 }
 0x11c   :  { %921 = vmatprep.mubr.bf16.mxu1 %v1016_v42 }
 0x123   :  { %922 = vmatmul.mubr.bf16.gmra.mrb[4].mxu1 %v1017_v43  ;;  %v624_v43 = vld [vmem:[%s1210_s4] sm:$0xff] }
 0x124   :  { %925 = vmatprep.mubr.bf16.mxu1 %v1018_v44 }
 0x12b   :  { %926 = vmatmul.mubr.bf16.gmra.mrb[8].mxu1 %v1019_v45 }
 0x12c   :  { %929 = vmatprep.mubr.bf16.mxu1 %v1020_v46 }
 0x133   :  { %930 = vmatmul.mubr.bf16.gmra.mrb[12].mxu1 %v1021_v47 }
 0x1ee   :  { %v919_v51 = vpop.f32.mrb[0].mxu1 }
 0x1ef   :  { %v514_v52 = vadd.f32 %v919_v51, %v1163_v50  ;;  %v391_v53 = vpop.f32.mrb[1].mxu1 }
 0x1f0   :  { %v512_v54 = vadd.f32 %v1163_v50, %v391_v53  ;;  %v920_v55 = vpop.f32.mrb[2].mxu1 }
 0x1f1   :  { %v515_v56 = vadd.f32 %v920_v55, %v1163_v50  ;;  %v394_v57 = vpop.f32.mrb[3].mxu1  ;;  %v530_v59 = vmax.f32 %v514_v52, 0.0 }
 0x1f2   :  { %v513_v58 = vadd.f32 %v1163_v50, %v394_v57  ;;  %v528_v61 = vmax.f32 %v512_v54, 0.0 }
 0x1f3   :  { %v531_v60 = vmax.f32 %v515_v56, 0.0 }
 0x1f4   :  { %v529_v62 = vmax.f32 %v513_v58, 0.0 }
 0x1f5   :  { %v781_v63 = vpack.c.bf16 %v531_v60, %v530_v59 }
 0x1f6   :  { %v776_v0 = vpack.c.bf16 %v529_v62, %v528_v61  ;;  %v923_v1 = vpop.f32.mrb[4].mxu1 }
 0x1f7   :  { %813 = vst [vmem:[#allocation3 + $0x8] sm:$0xff] %v781_v63   ;;  %v518_v2 = vadd.f32 %v923_v1, %v1163_v50  ;;  %v407_v3 = vpop.f32.mrb[5].mxu1 }
 0x1f8   :  { %777 = vst [vmem:[#allocation3] sm:$0xff] %v776_v0   ;;  %v516_v4 = vadd.f32 %v1163_v50, %v407_v3  ;;  %v924_v5 = vpop.f32.mrb[6].mxu1  ;;  %970 = vmatpush3.bf16.msra.mxu0 %v776_v0 }
 0x1f9   :  { %v519_v6 = vadd.f32 %v924_v5, %v1163_v50  ;;  %v410_v7 = vpop.f32.mrb[7].mxu1  ;;  %971 = vmatprep.subr.bf16.mxu0 %v1046_v48  ;;  %v534_v9 = vmax.f32 %v518_v2, 0.0 }
 0x1fa   :  { %v517_v8 = vadd.f32 %v1163_v50, %v410_v7  ;;  %v532_v11 = vmax.f32 %v516_v4, 0.0 }
 0x1fb   :  { %v535_v10 = vmax.f32 %v519_v6, 0.0 }
 0x1fc   :  { %v533_v12 = vmax.f32 %v517_v8, 0.0  ;;  %973 = vmatpush3.bf16.msra.mxu0 %v781_v63 }
 0x1fd   :  { %v791_v13 = vpack.c.bf16 %v535_v10, %v534_v9  ;;  %974 = vmatprep.subr.bf16.mxu0 %v1046_v48 }
 0x1fe   :  { %v786_v14 = vpack.c.bf16 %v533_v12, %v532_v11  ;;  %v927_v15 = vpop.f32.mrb[8].mxu1 }
 0x1ff   :  { %815 = vst [vmem:[#allocation3 + $0x18] sm:$0xff] %v791_v13   ;;  %v522_v16 = vadd.f32 %v927_v15, %v1163_v50  ;;  %v423_v17 = vpop.f32.mrb[9].mxu1 }
 0x200   :  { %814 = vst [vmem:[#allocation3 + $0x10] sm:$0xff] %v786_v14   ;;  %v520_v18 = vadd.f32 %v1163_v50, %v423_v17  ;;  %v928_v19 = vpop.f32.mrb[10].mxu1  ;;  %976 = vmatpush3.bf16.msra.mxu0 %v786_v14 }
 0x201   :  { %v523_v20 = vadd.f32 %v928_v19, %v1163_v50  ;;  %v426_v21 = vpop.f32.mrb[11].mxu1  ;;  %977 = vmatprep.subr.bf16.mxu0 %v1046_v48  ;;  %v538_v23 = vmax.f32 %v522_v16, 0.0 }
 0x202   :  { %v521_v22 = vadd.f32 %v1163_v50, %v426_v21  ;;  %v536_v25 = vmax.f32 %v520_v18, 0.0 }
 0x203   :  { %v539_v24 = vmax.f32 %v523_v20, 0.0 }
 0x204   :  { %v537_v26 = vmax.f32 %v521_v22, 0.0  ;;  %979 = vmatpush3.bf16.msra.mxu0 %v791_v13 }
 0x205   :  { %v801_v27 = vpack.c.bf16 %v539_v24, %v538_v23  ;;  %980 = vmatprep.subr.bf16.mxu0 %v1046_v48 }
 0x206   :  { %v796_v28 = vpack.c.bf16 %v537_v26, %v536_v25  ;;  %v931_v29 = vpop.f32.mrb[12].mxu1 }
 0x207   :  { %817 = vst [vmem:[#allocation3 + $0x28] sm:$0xff] %v801_v27   ;;  %v526_v30 = vadd.f32 %v931_v29, %v1163_v50  ;;  %v439_v31 = vpop.f32.mrb[13].mxu1 }
 0x208   :  { %816 = vst [vmem:[#allocation3 + $0x20] sm:$0xff] %v796_v28   ;;  %v524_v32 = vadd.f32 %v1163_v50, %v439_v31  ;;  %v932_v33 = vpop.f32.mrb[14].mxu1  ;;  %982 = vmatpush3.bf16.msra.mxu0 %v796_v28 }
 0x209   :  { %v527_v34 = vadd.f32 %v932_v33, %v1163_v50  ;;  %v442_v35 = vpop.f32.mrb[15].mxu1  ;;  %983 = vmatprep.subr.bf16.mxu0 %v1046_v48  ;;  %v542_v37 = vmax.f32 %v526_v30, 0.0 }
 0x20a   :  { %v525_v36 = vadd.f32 %v1163_v50, %v442_v35  ;;  %v540_v39 = vmax.f32 %v524_v32, 0.0 }
 0x20b   :  { %v543_v38 = vmax.f32 %v527_v34, 0.0 }
 0x20c   :  { %v541_v40 = vmax.f32 %v525_v36, 0.0  ;;  %985 = vmatpush3.bf16.msra.mxu0 %v801_v27 }
 0x20d   :  { %v811_v41 = vpack.c.bf16 %v543_v38, %v542_v37  ;;  %986 = vmatprep.subr.bf16.mxu0 %v1046_v48 }
 0x20e   :  { %v806_v42 = vpack.c.bf16 %v541_v40, %v540_v39 }
 0x20f   :  { %819 = vst [vmem:[#allocation3 + $0x38] sm:$0xff] %v811_v41  }
 0x210   :  { %818 = vst [vmem:[#allocation3 + $0x30] sm:$0xff] %v806_v42   ;;  %988 = vmatpush3.bf16.msra.mxu0 %v806_v42 }
 0x211   :  { %989 = vmatprep.subr.bf16.mxu0 %v1046_v48 }
 0x214   :  { %991 = vmatpush3.bf16.msra.mxu0 %v811_v41 }
 0x217   :  { %966 = vmatmul.mubr.f32.vlgmr.msra.gmra.mrb[16].mxu0 %v624_v43 }
 0x218   :  { %1033 = shalt.err (!%p1030_p4)
}
 0x219   :  { %s1034_s25 = scalar_lea.hbm %s1211_s5, 1024 }
 0x21a   :  { %p1035_p5 = scmp.ne.s32.totalorder %s1211_s5, %s1034_s25  ;;  %p1038_p6 = scmp.lt.u32.totalorder %s1034_s25, %s1211_s5 }
 0x21c   :  { %p1040_p7 = pnand %p1038_p6, %p1035_p5 }
 0x21e   :  { %1043 = shalt.err (!%p1040_p7)
}
 0x21f   :  { %s1050_s29 = smov 64   ;;  %s1051_s1 = smov 4  }
 0x220   :  { %707 = dma.vmem_to_hbm [thread:$0]  %s702_s22, 1024, %s1211_s5, [#allocation4], %s1050_s29, %s1050_s29, %s1051_s1  }
 0x2ea   :  { %v691_v44 = vpop.f32.mrb[16].mxu0 }
 0x2eb   :  { %695 = vst [vmem:[%s1212_s6] sm:$0xff] %v691_v44  ;;  %v967_v45 = vpop.f32.mrb[17].mxu0 }
 0x2ec   :  { %1044 = dma.done.wait [#allocation4], 1024  }
 0x2ed   :  { %1045 = vsyncadd [#allocation4], 4294966272 }
 0x2ee   :  { %715 = vsyncpa [#allocation4], 1 }

</bundles_post_ra>
